<compile_context>
chip_gen: v6e
topology: v6e:2x2x1
jax: 0.10.0
libtpu: 0.0.40
codegen_flags: <defaults>
</compile_context>

<pallas_src>
import functools

import jax
import jax.numpy as jnp
from jax.experimental import pallas as pl
from jax.experimental.pallas import tpu as pltpu


def _round_up(x: int, m: int) -> int:
    return ((x + m - 1) // m) * m


def _predict_kernel(hu1_ref, hu2_ref, it_ref, w1i_ref, w2_ref, b2_ref,
                    o1_ref, o2_ref):
    """One (user b, item-tile j) grid step.

    hu1_ref, hu2_ref : [1, hid]     user-side hidden pre-activation (b1 folded in)
    it_ref           : [T, emb]     item features for this tile
    w1i_ref          : [emb, hid]   item half of W1^T (resident, constant index map)
    w2_ref           : [1, hid]     W2 as a row (resident)
    b2_ref           : [1]  (SMEM)  scalar output bias
    o1_ref, o2_ref   : [1, T]       lane-dense sigmoid outputs
    """
    # Item contribution to the hidden layer is shared by both domains (f32 acc).
    hi = jnp.dot(it_ref[...], w1i_ref[...], preferred_element_type=jnp.float32)
    w2 = w2_ref[...]            # [1, hid]
    b2 = b2_ref[0]              # scalar from SMEM

    def head(hu_row):
        h = jnp.maximum(hi + hu_row, 0.0)                         # ReLU, [T, hid]
        # [1, hid] x [T, hid] contracted over hid -> [1, T]: output is lane-dense,
        # so no 1-wide masked stores and no explicit transpose is needed.
        z = jax.lax.dot_general(w2, h, (((1,), (1,)), ((), ())),
                                preferred_element_type=jnp.float32) + b2
        return jax.nn.sigmoid(z)

    o1_ref[...] = head(hu1_ref[...])
    o2_ref[...] = head(hu2_ref[...])


@functools.partial(jax.jit, static_argnames=("tile_n", "items_bf16"))
def predict_module_forward(user_spf1, user_spf2, i_feat, params, *,
                           tile_n=512, items_bf16=False):
    """JAX/Pallas equivalent of predictModule.forward.

    user_spf1, user_spf2 : [bs, emb]
    i_feat               : [bs, n, emb]
    returns (logits_d1, logits_d2), each of shape [bs, n].
    (Note: torch's .squeeze() would additionally drop bs or n if they equal 1;
     here the result is always rank-2 [bs, n].)
    """
    w1, b1, w2, b2 = params["w1"], params["b1"], params["w2"], params["b2"]
    bs, n, emb = i_feat.shape
    hid = w1.shape[0]

    # PyTorch Linear: y = x @ W1.T + b1 with x = cat(user, item).
    w1_t = w1.T                      # [2*emb, hid]
    w1_u = w1_t[:emb, :]             # [emb, hid]  (user half)
    w1_i = w1_t[emb:, :]             # [emb, hid]  (item half)

    # User-side hidden contribution computed ONCE per user (tiny XLA matmul),
    # with b1 folded in -> the kernel never sees user features or b1.
    hu1 = (user_spf1 @ w1_u + b1[None, :]).astype(jnp.float32)[:, None, :]  # [bs,1,hid]
    hu2 = (user_spf2 @ w1_u + b1[None, :]).astype(jnp.float32)[:, None, :]  # [bs,1,hid]

    w2_row = w2.reshape(1, hid).astype(jnp.float32)   # [1, hid]
    b2_1d = b2.reshape(1).astype(jnp.float32)         # [1]  -> SMEM scalar

    # Item-tile size: multiple of 128 lanes when tiling (lane-dense output),
    # otherwise a single tile spanning all items rounded to the 8-sublane granule.
    if n >= tile_n:
        tn = _round_up(tile_n, 128)
    else:
        tn = _round_up(n, 8)
    n_pad = _round_up(n, tn)

    it = i_feat
    if n_pad != n:
        it = jnp.pad(it, ((0, 0), (0, n_pad - n), (0, 0)))   # zero rows: harmless
    item_dtype = jnp.bfloat16 if items_bf16 else jnp.float32
    it = it.astype(item_dtype)
    w1_i = w1_i.astype(item_dtype)

    grid = (bs, n_pad // tn)

    out_shape = (
        jax.ShapeDtypeStruct((bs, 1, n_pad), jnp.float32),
        jax.ShapeDtypeStruct((bs, 1, n_pad), jnp.float32),
    )

    o1, o2 = pl.pallas_call(
        _predict_kernel,
        out_shape=out_shape,
        grid_spec=pltpu.PrefetchScalarGridSpec(
            num_scalar_prefetch=0,
            grid=grid,
            in_specs=[
                pl.BlockSpec((None, 1, hid), lambda b, j: (b, 0, 0)),    # hu1
                pl.BlockSpec((None, 1, hid), lambda b, j: (b, 0, 0)),    # hu2
                pl.BlockSpec((None, tn, emb), lambda b, j: (b, j, 0)),   # item tile
                pl.BlockSpec((emb, hid), lambda b, j: (0, 0)),           # W1_i (resident)
                pl.BlockSpec((1, hid), lambda b, j: (0, 0)),             # W2 row (resident)
                pl.BlockSpec(memory_space=pltpu.MemorySpace.SMEM),       # b2 scalar
            ],
            out_specs=[
                pl.BlockSpec((None, 1, tn), lambda b, j: (b, 0, j)),     # logits_d1
                pl.BlockSpec((None, 1, tn), lambda b, j: (b, 0, j)),     # logits_d2
            ],
        ),
        compiler_params=pltpu.CompilerParams(
            dimension_semantics=("parallel", "parallel"),
        ),
    )(hu1, hu2, it, w1_i, w2_row, b2_1d)

    logits_d1 = o1[:, 0, :n]   # drop item padding
    logits_d2 = o2[:, 0, :n]
    return logits_d1, logits_d2


def init_params(key, emb_dim, hid_dim):
    """Deterministic synthetic init matching nn.Linear shapes."""
    k1, k2, k3, k4 = jax.random.split(key, 4)
    bound1 = 1.0 / jnp.sqrt(2.0 * emb_dim)
    bound2 = 1.0 / jnp.sqrt(float(hid_dim))
    return {
        "w1": jax.random.uniform(k1, (hid_dim, 2 * emb_dim), jnp.float32, -bound1, bound1),
        "b1": jax.random.uniform(k2, (hid_dim,), jnp.float32, -bound1, bound1),
        "w2": jax.random.uniform(k3, (1, hid_dim), jnp.float32, -bound2, bound2),
        "b2": jax.random.uniform(k4, (1,), jnp.float32, -bound2, bound2),
    }


def _reference(user_spf1, user_spf2, i_feat, params):
    """Pure-JAX reference mirroring the PyTorch forward exactly."""
    w1, b1, w2, b2 = params["w1"], params["b1"], params["w2"], params["b2"]

    def branch(u):
        u_e = jnp.broadcast_to(u[:, None, :], i_feat.shape)
        x = jnp.concatenate([u_e, i_feat], axis=-1)            # [bs, n, 2*emb]
        h = jnp.maximum(x @ w1.T + b1, 0.0)
        z = h @ w2.T + b2                                      # [bs, n, 1]
        return jax.nn.sigmoid(z).squeeze()

    return branch(user_spf1), branch(user_spf2)


if __name__ == "__main__":
    # Small shapes consistent with the module.
    bs, n, emb_dim, hid_dim = 2, 8, 16, 32

    key = jax.random.PRNGKey(0)
    k_u1, k_u2, k_i, k_p = jax.random.split(key, 4)
    user_spf1 = jax.random.normal(k_u1, (bs, emb_dim), jnp.float32)
    user_spf2 = jax.random.normal(k_u2, (bs, emb_dim), jnp.float32)
    i_feat = jax.random.normal(k_i, (bs, n, emb_dim), jnp.float32)
    params = init_params(k_p, emb_dim, hid_dim)

    logits_d1, logits_d2 = predict_module_forward(user_spf1, user_spf2, i_feat, params)
    jax.block_until_ready((logits_d1, logits_d2))

    ref_d1, ref_d2 = _reference(user_spf1, user_spf2, i_feat, params)
    assert logits_d1.shape == (bs, n) and logits_d2.shape == (bs, n)
    assert jnp.allclose(logits_d1, ref_d1, atol=1e-5, rtol=1e-4)
    assert jnp.allclose(logits_d2, ref_d2, atol=1e-5, rtol=1e-4)

    # Second config: exercises the multi-tile grid and item-padding path.
    bs2, n2, emb2, hid2 = 3, 300, 32, 64
    k_u1b, k_u2b, k_ib, k_pb = jax.random.split(jax.random.PRNGKey(1), 4)
    u1b = jax.random.normal(k_u1b, (bs2, emb2), jnp.float32)
    u2b = jax.random.normal(k_u2b, (bs2, emb2), jnp.float32)
    ifb = jax.random.normal(k_ib, (bs2, n2, emb2), jnp.float32)
    pb = init_params(k_pb, emb2, hid2)
    d1b, d2b = predict_module_forward(u1b, u2b, ifb, pb, tile_n=128)
    jax.block_until_ready((d1b, d2b))
    r1b, r2b = _reference(u1b, u2b, ifb, pb)
    assert d1b.shape == (bs2, n2) and d2b.shape == (bs2, n2)
    assert jnp.allclose(d1b, r1b, atol=1e-5, rtol=1e-4)
    assert jnp.allclose(d2b, r2b, atol=1e-5, rtol=1e-4)

    print("KERNEL_OK")
</pallas_src>

<mosaic_0001>
module attributes {stable_mosaic.version = 11 : i64} {
  func.func @_predict_kernel(%arg0: i32, %arg1: i32, %arg2: memref<1x1x32xf32, #tpu.memory_space<vmem>>, %arg3: memref<1x1x32xf32, #tpu.memory_space<vmem>>, %arg4: memref<1x8x16xf32, #tpu.memory_space<vmem>>, %arg5: memref<16x32xf32, #tpu.memory_space<vmem>>, %arg6: memref<1x32xf32, #tpu.memory_space<vmem>>, %arg7: memref<1xf32, #tpu.memory_space<smem>>, %arg8: memref<1x1x8xf32, #tpu.memory_space<vmem>>, %arg9: memref<1x1x8xf32, #tpu.memory_space<vmem>>) attributes {dimension_semantics = [#tpu.dimension_semantics<parallel>, #tpu.dimension_semantics<parallel>], iteration_bounds = array<i64: 2, 1>, scalar_prefetch = 0 : i64, scratch_operands = 0 : i64, tpu.core_type = #tpu.core_type<tc>, window_params = [{transform_indices = @transform_0, window_bounds = array<i64: 1, 1, 32>}, {transform_indices = @transform_1, window_bounds = array<i64: 1, 1, 32>}, {transform_indices = @transform_2, window_bounds = array<i64: 1, 8, 16>}, {pipeline_mode = #tpu.pipeline_mode<synchronous>, transform_indices = @transform_3, window_bounds = array<i64: 16, 32>}, {pipeline_mode = #tpu.pipeline_mode<synchronous>, transform_indices = @transform_4, window_bounds = array<i64: 1, 32>}, {transform_indices = @transform_5, window_bounds = array<i64: 1>}, {transform_indices = @transform_6, window_bounds = array<i64: 1, 1, 8>}, {transform_indices = @transform_7, window_bounds = array<i64: 1, 1, 8>}]} {
    %c0 = arith.constant 0 : index
    %c0_0 = arith.constant 0 : index
    %c0_1 = arith.constant 0 : index
    %0 = vector.load %arg4[%c0, %c0_0, %c0_1] : memref<1x8x16xf32, #tpu.memory_space<vmem>>, vector<1x8x16xf32>
    %1 = vector.shape_cast %0 : vector<1x8x16xf32> to vector<8x16xf32>
    %c0_2 = arith.constant 0 : index
    %c0_3 = arith.constant 0 : index
    %2 = vector.load %arg5[%c0_2, %c0_3] : memref<16x32xf32, #tpu.memory_space<vmem>>, vector<16x32xf32>
    %cst = arith.constant dense<0.000000e+00> : vector<8x32xf32>
    %3 = tpu.matmul %1, %2, %cst {dimension_numbers = #tpu.dot_dimension_numbers<[1], [0], [0], [1], [0, 0, 1, 1], [], []>} : vector<8x16xf32>, vector<16x32xf32>, vector<8x32xf32> -> vector<8x32xf32>
    %c0_4 = arith.constant 0 : index
    %c0_5 = arith.constant 0 : index
    %4 = vector.load %arg6[%c0_4, %c0_5] : memref<1x32xf32, #tpu.memory_space<vmem>>, vector<1x32xf32>
    %c0_6 = arith.constant 0 : index
    %5 = memref.load %arg7[%c0_6] : memref<1xf32, #tpu.memory_space<smem>>
    %c0_7 = arith.constant 0 : index
    %c0_8 = arith.constant 0 : index
    %c0_9 = arith.constant 0 : index
    %6 = vector.load %arg2[%c0_7, %c0_8, %c0_9] : memref<1x1x32xf32, #tpu.memory_space<vmem>>, vector<1x1x32xf32>
    %7 = vector.shape_cast %6 : vector<1x1x32xf32> to vector<1x32xf32>
    %8 = vector.broadcast %7 : vector<1x32xf32> to vector<8x32xf32>
    %9 = arith.addf %3, %8 : vector<8x32xf32>
    %cst_10 = arith.constant 0.000000e+00 : f32
    %10 = vector.broadcast %cst_10 : f32 to vector<8x32xf32>
    %11 = arith.maximumf %9, %10 : vector<8x32xf32>
    %cst_11 = arith.constant dense<0.000000e+00> : vector<1x8xf32>
    %12 = tpu.matmul %4, %11, %cst_11 {dimension_numbers = #tpu.dot_dimension_numbers<[1], [1], [0], [0], [0, 0, 1, 0], [], []>} : vector<1x32xf32>, vector<8x32xf32>, vector<1x8xf32> -> vector<1x8xf32>
    %13 = vector.broadcast %5 : f32 to vector<1x8xf32>
    %14 = arith.addf %12, %13 : vector<1x8xf32>
    %15 = arith.negf %14 : vector<1x8xf32>
    %16 = math.exp %15 : vector<1x8xf32>
    %cst_12 = arith.constant 1.000000e+00 : f32
    %17 = vector.broadcast %cst_12 : f32 to vector<1x8xf32>
    %18 = arith.addf %17, %16 : vector<1x8xf32>
    %19 = arith.divf %17, %18 : vector<1x8xf32>
    %c0_13 = arith.constant 0 : index
    %c0_14 = arith.constant 0 : index
    %c0_15 = arith.constant 0 : index
    %20 = vector.load %arg8[%c0_13, %c0_14, %c0_15] : memref<1x1x8xf32, #tpu.memory_space<vmem>>, vector<1x1x8xf32>
    %21 = vector.shape_cast %20 : vector<1x1x8xf32> to vector<1x8xf32>
    %22 = vector.shape_cast %19 : vector<1x8xf32> to vector<1x1x8xf32>
    tpu.vector_store %arg8[%c0_13, %c0_14, %c0_15], %22 {strides = array<i32>} : memref<1x1x8xf32, #tpu.memory_space<vmem>>, vector<1x1x8xf32>,
    %c0_16 = arith.constant 0 : index
    %c0_17 = arith.constant 0 : index
    %c0_18 = arith.constant 0 : index
    %23 = vector.load %arg3[%c0_16, %c0_17, %c0_18] : memref<1x1x32xf32, #tpu.memory_space<vmem>>, vector<1x1x32xf32>
    %24 = vector.shape_cast %23 : vector<1x1x32xf32> to vector<1x32xf32>
    %25 = vector.broadcast %24 : vector<1x32xf32> to vector<8x32xf32>
    %26 = arith.addf %3, %25 : vector<8x32xf32>
    %cst_19 = arith.constant 0.000000e+00 : f32
    %27 = vector.broadcast %cst_19 : f32 to vector<8x32xf32>
    %28 = arith.maximumf %26, %27 : vector<8x32xf32>
    %cst_20 = arith.constant dense<0.000000e+00> : vector<1x8xf32>
    %29 = tpu.matmul %4, %28, %cst_20 {dimension_numbers = #tpu.dot_dimension_numbers<[1], [1], [0], [0], [0, 0, 1, 0], [], []>} : vector<1x32xf32>, vector<8x32xf32>, vector<1x8xf32> -> vector<1x8xf32>
    %30 = vector.broadcast %5 : f32 to vector<1x8xf32>
    %31 = arith.addf %29, %30 : vector<1x8xf32>
    %32 = arith.negf %31 : vector<1x8xf32>
    %33 = math.exp %32 : vector<1x8xf32>
    %cst_21 = arith.constant 1.000000e+00 : f32
    %34 = vector.broadcast %cst_21 : f32 to vector<1x8xf32>
    %35 = arith.addf %34, %33 : vector<1x8xf32>
    %36 = arith.divf %34, %35 : vector<1x8xf32>
    %c0_22 = arith.constant 0 : index
    %c0_23 = arith.constant 0 : index
    %c0_24 = arith.constant 0 : index
    %37 = vector.load %arg9[%c0_22, %c0_23, %c0_24] : memref<1x1x8xf32, #tpu.memory_space<vmem>>, vector<1x1x8xf32>
    %38 = vector.shape_cast %37 : vector<1x1x8xf32> to vector<1x8xf32>
    %39 = vector.shape_cast %36 : vector<1x8xf32> to vector<1x1x8xf32>
    tpu.vector_store %arg9[%c0_22, %c0_23, %c0_24], %39 {strides = array<i32>} : memref<1x1x8xf32, #tpu.memory_space<vmem>>, vector<1x1x8xf32>,
    return
  }
  func.func @transform_0(%arg0: i32, %arg1: i32) -> (i32, i32, i32) {
    %c0_i32 = arith.constant 0 : i32
    %c0_i32_0 = arith.constant 0 : i32
    %c0_i32_1 = arith.constant 0 : i32
    return %arg0, %c0_i32, %c0_i32_0 : i32, i32, i32
  }
  func.func @transform_1(%arg0: i32, %arg1: i32) -> (i32, i32, i32) {
    %c0_i32 = arith.constant 0 : i32
    %c0_i32_0 = arith.constant 0 : i32
    %c0_i32_1 = arith.constant 0 : i32
    return %arg0, %c0_i32, %c0_i32_0 : i32, i32, i32
  }
  func.func @transform_2(%arg0: i32, %arg1: i32) -> (i32, i32, i32) {
    %c0_i32 = arith.constant 0 : i32
    %c0_i32_0 = arith.constant 0 : i32
    return %arg0, %arg1, %c0_i32 : i32, i32, i32
  }
  func.func @transform_3(%arg0: i32, %arg1: i32) -> (i32, i32) {
    %c0_i32 = arith.constant 0 : i32
    %c0_i32_0 = arith.constant 0 : i32
    %c0_i32_1 = arith.constant 0 : i32
    return %c0_i32, %c0_i32_0 : i32, i32
  }
  func.func @transform_4(%arg0: i32, %arg1: i32) -> (i32, i32) {
    %c0_i32 = arith.constant 0 : i32
    %c0_i32_0 = arith.constant 0 : i32
    %c0_i32_1 = arith.constant 0 : i32
    return %c0_i32, %c0_i32_0 : i32, i32
  }
  func.func @transform_5(%arg0: i32, %arg1: i32) -> i32 {
    %c0_i32 = arith.constant 0 : i32
    %c0_i32_0 = arith.constant 0 : i32
    return %c0_i32 : i32
  }
  func.func @transform_6(%arg0: i32, %arg1: i32) -> (i32, i32, i32) {
    %c0_i32 = arith.constant 0 : i32
    %c0_i32_0 = arith.constant 0 : i32
    return %arg0, %c0_i32, %arg1 : i32, i32, i32
  }
  func.func @transform_7(%arg0: i32, %arg1: i32) -> (i32, i32, i32) {
    %c0_i32 = arith.constant 0 : i32
    %c0_i32_0 = arith.constant 0 : i32
    return %arg0, %c0_i32, %arg1 : i32, i32, i32
  }
}

</mosaic_0001>

<bundles_post_ra>
// kernel: predict_module_forward.1
= control target key start
LH: loop header
LB: loop body
LE: loop exit
PB: predicated region body
PF: predicated region fallthrough
CT: control target
= control target key end

     0   :  { %s1181_s0 = inlined_call_operand.vmem [shape: f32[2,1,32], index: 0, kind: input, shape index: {}]   ;;  %s1182_s1 = inlined_call_operand.vmem [shape: f32[2,1,32], index: 1, kind: input, shape index: {}]   ;;  %s1183_s2 = inlined_call_operand.vmem [shape: f32[2,8,16], index: 2, kind: input, shape index: {}]   ;;  %s1184_s3 = inlined_call_operand.vmem [shape: f32[16,32], index: 3, kind: input, shape index: {}]   ;;  %s1185_s4 = inlined_call_operand.vmem [shape: f32[1,32], index: 4, kind: input, shape index: {}]   ;;  %s1186_s5 = inlined_call_operand.<no memory space> [shape: f32[1], index: 5, kind: input, shape index: {}]   ;;  %s1187_s6 = inlined_call_operand.hbm [shape: f32[2,1,8], index: 6, kind: output, shape index: {0}]   ;;  %s1188_s7 = inlined_call_operand.hbm [shape: f32[2,1,8], index: 7, kind: output, shape index: {1}]  }
   0x1   :  { %13 = sst [smem:[#allocation2]] %s1186_s5 }
   0x2   :  { %14 = vsyncpa [#allocation4], 0 }
   0x3   :  { %16 = vsyncpa [#allocation4 + $0x1], 0 }
   0x4   :  { %17 = vsyncpa [#allocation6], 0 }
   0x5   :  { %19 = vsyncpa [#allocation6 + $0x1], 0  ;;  %s1016_s26 = smov 0   ;;  %s1018_s27 = smov 0  }
   0x6   :  { %s1020_s28 = smov 0   ;;  %s1022_s29 = smov 0  }
   0x7   :  { %s1024_s30 = smov 0   ;;  %s1026_s8 = smov 0  }
   0x8 LB: > { %s748_s5 = sadd.s32 4294967295, %s967_s8   ;;  %s749_s9 = sadd.s32 4294967294, %s967_s8   ;;  %s967_s8 = sphi %s1026_s8, %s25_s8   ;;  %s963_s30 = sphi %s1024_s30, %s1197_s30   ;;  %s959_s29 = sphi %s1022_s29, %s1196_s29   ;;  %s955_s28 = sphi %s1020_s28, %s1195_s28   ;;  %s951_s27 = sphi %s1018_s27, %s1194_s27   ;;  %s947_s26 = sphi %s1016_s26, %s1193_s26  }
   0x9   : > { %s37_s10 = sadd.s32 1, %s963_s30  ;;  %s189_s11 = sadd.s32 1, %s955_s28 }
   0xa   : > { %p39_p0 = scmp.ge.s32.totalorder %s37_s10, 2  ;;  %p199_p1 = scmp.ne.s32.totalorder %s955_s28, %s951_s27 }
   0xb   : > { %p200_p2 = scmp.eq.s32.totalorder %s748_s5, 1  ;;  %p205_p3 = scmp.ne.s32.totalorder %s951_s27, %s947_s26 }
   0xc   : > { %s1199_s10 = smov (%p39_p0, %s37_s10), 0  ;;  %p206_p5 = scmp.eq.s32.totalorder %s749_s9, 1 }
   0xd   : > { %p1056_p4 = por %p200_p2, %p199_p1  ;;  %s184_s13 = ssub.s32 %s963_s30, %s1199_s10 }
   0xe   : > { %p752_p6 = scmp.ge.s32.totalorder %s967_s8, 1  ;;  %p187_p7 = scmp.eq.s32.totalorder %s184_s13, 0 }
   0xf   : > { %p1063_p8 = por %p206_p5, %p205_p3  ;;  %p283_p9 = scmp.lt.s32.totalorder %s967_s8, 3 }
  0x10   : > { %s1069_s15 = scalar_select %p187_p7, %s955_s28, %s189_s11  }
  0x11   : > { %p284_p10 = pnand %p752_p6, %p283_p9 }
  0x12   : > { %p326_p11 = scmp.lt.s32.totalorder (!%p284_p10), %s959_s29, 1  ;;  %s417_s19 = sld [smem:[#allocation2]] (!%p284_p10) }
  0x13   : > { %287 = sbr.rel (%p284_p10) target bundleno = 491 (0x1eb), region = 44 }
  0x18   : > { %v341_v0 = vld [vmem:[%s1184_s3 + $0x8] sm:$0xff]  ;;  %v969_v1 = vmov 0.0   ;;  %v340_v2 = vld [vmem:[%s1184_s3] sm:$0xff]  ;;  %vm970_vm0 = vmmov 0   ;;  %s327_s20 = scalar_select %p326_p11, %s959_s29, 1  ;;  %vm342_vm1 = vcmask 130048   ;;  %v427_v13 = vstv %s417_s19 }
  0x19   : > { %774 = vmatprep.subr.mxu0 %v969_v1  ;;  %778 = vmatprep.mubr.msk.f32.mxu0 %vm970_vm0, %v969_v1  ;;  %vm428_vm2 = vcmask 261120   ;;  %v416_v12 = vld [vmem:[%s1185_s4] sm:$0x1]  ;;  %vm511_vm3 = vcmask 57344   ;;  %s971_s19 = smov [#allocation3]  }
  0x1a   : > { %775 = vmatpush3.msra.mxu0 %v341_v0  ;;  %781 = vmatprep.subr.mxu1 %v969_v1  ;;  %s753_s21 = sshll.u32 %s327_s20, 3  ;;  %s328_s9 = scalar_lea.vmem %s1181_s0, %s327_s20 }
  0x1b   : > { %776 = vmatprep.subr.mxu0 %v969_v1  ;;  %783 = vmatprep.mubr.msk.f32.mxu1 %vm970_vm0, %v969_v1  ;;  %s338_s24 = scalar_lea.vmem %s1183_s2, %s753_s21  ;;  %s331_s16 = scalar_lea.vmem %s1182_s1, %s327_s20  ;;  %v755_v4 = vld [vmem:[%s328_s9] ss:$0 sm:$0xff] }
  0x1c   : > { %777 = vmatpush3.msra.mxu0 %v340_v2  ;;  %v339_v3 = vld [vmem:[%s338_s24] sm:$0xff]  ;;  %s1092_s20 = sand.u32 1, %s951_s27   ;;  %s763_s21 = sshll.u32 %s959_s29, 4 }
  0x1d   : > { %786 = vmatprep.subr.mxu0 %v969_v1  ;;  %779 = vmatmul.mubr.msk.f32.vlgmr.msra.gmra.mxu0 %vm342_vm1, %v339_v3  ;;  %v759_v5 = vld [vmem:[%s331_s16] ss:$0 sm:$0xff]  ;;  %s319_s22 = scalar_lea.vmem [#allocation3], %s1092_s20  ;;  %s1189_s24 = scalar_lea.vmem [#allocation5], %s1092_s20 }
  0x1e   : > { %788 = vmatprep.mubr.msk.f32.mxu0 %vm970_vm0, %v969_v1  ;;  %s620_s23 = sshll.u32 %s319_s22, 4  ;;  %s634_s25 = sshll.u32 %s1189_s24, 4  ;;  %s1104_s23 = int_to_ptr.vmem [resolvable:$true] %s620_s23  ;;  %s1111_s25 = int_to_ptr.vmem [resolvable:$true] %s634_s25 }
  0x1f   : > { %s1102_s11 = scalar_lea.hbm %s1187_s6, %s763_s21  ;;  %s1109_s16 = scalar_lea.hbm %s1188_s7, %s763_s21 }
  0x20   : > { %s603_s17 = scalar_lea.sflag [#allocation4], %s1092_s20  ;;  %s861_s18 = scalar_lea.vmem %s1104_s23, 16 }
  0x21   : > { %p862_p12 = scmp.ne.s32.totalorder %s1104_s23, %s861_s18  ;;  %s865_s5 = sshll.u32 %s971_s19, 4  ;;  %s866_s5 = int_to_ptr.vmem [resolvable:$false] %s865_s5 }
  0x22   : > { %s867_s9 = scalar_lea.vmem %s866_s5, 32  ;;  %p868_p1 = scmp.lt.s32.totalorder %s1104_s23, %s866_s5 }
  0x23   : > { %p863_p13 = pnand %p862_p12, %p1056_p4  ;;  %p869_p2 = scmp.lt.s32.totalorder %s867_s9, %s861_s18 }
  0x25   : > { %p864_p0 = pneg %p863_p13  ;;  %p870_p3 = por %p869_p2, %p868_p1 }
  0x27   : > { %p871_p5 = pnand %p870_p3, %p864_p0 }
  0xdd   : > { %v412_v6 = vpop.f32.mrf.mxu0 }
  0xde   : > { %v425_v7 = vadd.f32 %v755_v4, %v412_v6  ;;  %v520_v8 = vadd.f32 %v759_v5, %v412_v6 }
  0xdf   : > { %v780_v9 = vpop.f32.mrf.mxu0 }
  0xe0   : > { %v426_v10 = vmax.f32 %v425_v7, 0.0  ;;  %v521_v11 = vmax.f32 %v520_v8, 0.0 }
  0xe2   : > { %782 = vmatpush3.xpose.msk.msra.mxu1 %vm428_vm2, %v426_v10  ;;  %787 = vmatpush3.xpose.msk.msra.mxu0 %vm428_vm2, %v521_v11 }
  0xe5   : > { %784 = vmatmul.mubr.msk.f32.vlgmr.msra.gmra.mxu1 %vm428_vm2, %v416_v12  ;;  %789 = vmatmul.mubr.msk.f32.vlgmr.msra.gmra.mxu0 %vm428_vm2, %v416_v12 }
 0x1a5   : > { %v501_v14 = vpop.f32.mrf.mxu1  ;;  %v591_v15 = vpop.f32.mrf.mxu0 }
 0x1a6   : > { %v502_v16 = vadd.f32 %v501_v14, %v427_v13  ;;  %v592_v17 = vadd.f32 %v591_v15, %v427_v13 }
 0x1a7   : > { %v785_v18 = vpop.f32.mrf.mxu1  ;;  %v790_v19 = vpop.f32.mrf.mxu0 }
 0x1a8   : > { %v758_v20 = vmul.f32 -1.442695, %v502_v16  ;;  %v762_v21 = vmul.f32 -1.442695, %v592_v17 }
 0x1aa   : > { %853 = vpow2.f32 %v758_v20 }
 0x1ab   : > { %855 = vpow2.f32 %v762_v21 }
 0x1b7   : > { %v854_v22 = vpop.eup %853 }
 0x1b8   : > { %v856_v23 = vpop.eup %855  ;;  %v508_v24 = vadd.f32 1.0, %v854_v22 }
 0x1b9   : > { %v598_v25 = vadd.f32 1.0, %v856_v23 }
 0x1ba   : > { %857 = vrcp.f32 %v508_v24 }
 0x1bb   : > { %859 = vrcp.f32 %v598_v25 }
 0x1c7   : > { %v858_v26 = vpop.eup %857 }
 0x1c8   : > { %v860_v27 = vpop.eup %859  ;;  %512 = vst.msk [vmem:[%s319_s22] sm:$0x1] %vm511_vm3, %v858_v26 }
 0x1c9   : > { %874 = shalt.err (!%p871_p5)
}
 0x1ca   : > { %s875_s21 = scalar_lea.hbm %s1102_s11, 16  ;;  %s879_s29 = scalar_lea.hbm %s1187_s6, 32 }
 0x1cb   : > { %p876_p6 = scmp.ne.s32.totalorder %s1102_s11, %s875_s21  ;;  %p880_p10 = scmp.lt.s32.totalorder %s1102_s11, %s1187_s6 }
 0x1cc   : > { %p881_p11 = scmp.lt.s32.totalorder %s879_s29, %s875_s21 }
 0x1cd   : > { %p877_p7 = pnand %p876_p6, %p1056_p4 }
 0x1ce   : > { %p882_p12 = por %p881_p11, %p880_p10 }
 0x1cf   : > { %p878_p9 = pneg %p877_p7 }
 0x1d1   : > { %p883_p13 = pnand %p882_p12, %p878_p9 }
 0x1d3   : > { %886 = shalt.err (!%p883_p13)
}
 0x1d4   : > { %791 = dma.vmem_to_hbm [thread:$0]  (%p1056_p4), %s1104_s23, 16, %s1102_s11, %s603_s17  }
 0x1d5   : > { %s1192_s18 = scalar_lea.vmem [#allocation5], %s1092_s20  ;;  %s607_s24 = scalar_lea.sflag [#allocation6], %s1092_s20 }
 0x1d6   : > { %601 = vst.msk [vmem:[%s1192_s18] sm:$0x1] %vm511_vm3, %v860_v27  ;;  %s887_s5 = scalar_lea.vmem %s1111_s25, 16  ;;  %s972_s9 = smov [#allocation5]  }
 0x1d7   : > { %p888_p0 = scmp.ne.s32.totalorder %s1111_s25, %s887_s5  ;;  %s891_s21 = sshll.u32 %s972_s9, 4  ;;  %s892_s21 = int_to_ptr.vmem [resolvable:$false] %s891_s21 }
 0x1d8   : > { %s893_s22 = scalar_lea.vmem %s892_s21, 32  ;;  %p894_p3 = scmp.lt.s32.totalorder %s1111_s25, %s892_s21 }
 0x1d9   : > { %p889_p1 = pnand %p888_p0, %p1056_p4  ;;  %p895_p5 = scmp.lt.s32.totalorder %s893_s22, %s887_s5 }
 0x1db   : > { %p890_p2 = pneg %p889_p1  ;;  %p896_p6 = por %p895_p5, %p894_p3 }
 0x1dd   : > { %p897_p7 = pnand %p896_p6, %p890_p2 }
 0x1df   : > { %900 = shalt.err (!%p897_p7)
}
 0x1e0   : > { %s901_s23 = scalar_lea.hbm %s1109_s16, 16  ;;  %s905_s17 = scalar_lea.hbm %s1188_s7, 32 }
 0x1e1   : > { %p902_p9 = scmp.ne.s32.totalorder %s1109_s16, %s901_s23  ;;  %p906_p12 = scmp.lt.s32.totalorder %s1109_s16, %s1188_s7 }
 0x1e2   : > { %p907_p13 = scmp.lt.s32.totalorder %s905_s17, %s901_s23 }
 0x1e3   : > { %p903_p10 = pnand %p902_p9, %p1056_p4 }
 0x1e4   : > { %p908_p0 = por %p907_p13, %p906_p12 }
 0x1e5   : > { %p904_p11 = pneg %p903_p10 }
 0x1e7   : > { %p909_p1 = pnand %p908_p0, %p904_p11 }
 0x1e9   : > { %912 = shalt.err (!%p909_p1)
}
 0x1ea   : > { %792 = dma.vmem_to_hbm [thread:$0]  (%p1056_p4), %s1111_s25, 16, %s1109_s16, %s607_s24  }
 0x1eb PF: > { %p802_p2 = scmp.ge.s32.totalorder %s967_s8, 2  ;;  %s646_s19 = sand.u32 1, %s947_s26  }
 0x1ec   : > { %s647_s18 = scalar_lea.sflag [#allocation4], %s646_s19 }
 0x1ed   : > { %p796_p3 = pnand %p802_p2, %p1063_p8 }
 0x1ef   : > { %p797_p5 = pneg %p796_p3 }
 0x1f1   : > { %938 = dma.done.wait (%p797_p5), %s647_s18, 16  }
 0x1f2   : > { %940 = vsyncadd (%p797_p5), %s647_s18, 4294967280  ;;  %s655_s5 = scalar_lea.sflag [#allocation6], %s646_s19 }
 0x1f3   : > { %942 = dma.done.wait (%p797_p5), %s655_s5, 16  }
 0x1f4   : > { %944 = vsyncadd (%p797_p5), %s655_s5, 4294967280  ;;  %s25_s8 = sadd.s32 1, %s967_s8   ;;  %s1193_s26 = smov %s951_s27 }
 0x1f5   : > { %p22_p6 = scmp.ge.s32.totalorder %s25_s8, 4   ;;  %s1194_s27 = smov %s955_s28 }
 0x1f6   : > { %s1195_s28 = smov %s1069_s15  ;;  %s1196_s29 = smov %s963_s30 }
 0x1f7   : > { %s1197_s30 = smov %s1199_s10  ;;  %24 = sbr.rel (!%p22_p6) target bundleno = 8 (0x8), region = 102 }
 0x1fc   :  { %659 = vsyncpa [#allocation4], 1 }
 0x1fd   :  { %661 = vsyncpa [#allocation4 + $0x1], 1 }
 0x1fe   :  { %662 = vsyncpa [#allocation6], 1 }
 0x1ff   :  { %664 = vsyncpa [#allocation6 + $0x1], 1 }

</bundles_post_ra>
